<compile_context>
chip_gen: v7x
topology: tpu7x:2x2x1
jax: 0.10.0
libtpu: 0.0.40
codegen_flags: <defaults>
</compile_context>

<pallas_src>
import functools

import jax
import jax.numpy as jnp
import numpy as np
from jax.experimental import pallas as pl
from jax.experimental.pallas import tpu as pltpu

# stand-in for constants.IMAGE_SIZE
IMAGE_SIZE = 32

# Max planes (N*C slices) per grid step. 512 planes of 16x16->32x32 f32 is
# ~0.5 MiB in / 2 MiB out per buffer -> ~6 MiB with double buffering + 1 MiB
# weight, comfortably below the 32 MiB default scoped VMEM on v5e/v6e/v7x.
_TB_MAX = 512


def _bilinear_matrix_np(out_size: int, in_size: int) -> np.ndarray:
    """Row-interpolation matrix W (out_size, in_size): y = W @ x reproduces
    torch bilinear resize (align_corners=False, half-pixel, edge-clamped)."""
    scale = in_size / out_size
    i = np.arange(out_size, dtype=np.float64)
    src = np.maximum((i + 0.5) * scale - 0.5, 0.0)   # torch clamps negative src
    x0 = np.minimum(np.floor(src).astype(np.int64), in_size - 1)
    x1 = np.minimum(x0 + 1, in_size - 1)
    l1 = src - x0
    l0 = 1.0 - l1
    W = np.zeros((out_size, in_size), np.float64)
    rows = np.arange(out_size)
    np.add.at(W, (rows, x0), l0)
    np.add.at(W, (rows, x1), l1)   # x0 == x1 at the edge -> weights sum to 1
    return W


@functools.lru_cache(maxsize=None)
def _kron_weight_t(h_out: int, w_out: int, h_in: int, w_in: int) -> jnp.ndarray:
    """Cached (H_in*W_in, H_out*W_out) f32 weight: out_flat = x_flat @ K^T."""
    wh = _bilinear_matrix_np(h_out, h_in)            # (H_out, H_in)
    ww = _bilinear_matrix_np(w_out, w_in)            # (W_out, W_in)
    k = np.kron(wh, ww)                              # (H_out*W_out, H_in*W_in)
    kt = np.ascontiguousarray(k.T).astype(np.float32)
    return jnp.asarray(kt)


def _upsample_kernel(kt_ref, x_ref, o_ref):
    # kt_ref: (P_in, P_out) f32, resident across the whole grid.
    # x_ref:  (1, TB, P_in)  native dtype.
    # o_ref:  (1, TB, P_out) native dtype (lane-dense last dim).
    x = x_ref[0].astype(jnp.float32)                              # (TB, P_in)
    out = jnp.dot(x, kt_ref[...], preferred_element_type=jnp.float32)
    o_ref[0] = out.astype(o_ref.dtype)


def upsample(image: jnp.ndarray, out_size: int = IMAGE_SIZE) -> jnp.ndarray:
    """Bilinear resize of an NCHW image to (out_size, out_size)."""
    N, C, H_in, W_in = image.shape
    H_out = W_out = out_size
    B = N * C
    P_in = H_in * W_in
    P_out = H_out * W_out

    # Guard the kron-weight footprint (fine for this module's image sizes).
    assert P_in * P_out * 4 <= 16 * 1024 * 1024, (
        "kron bilinear weight too large; use a separable formulation for "
        "large spatial sizes")

    kt = _kron_weight_t(H_out, W_out, H_in, W_in)    # (P_in, P_out) f32

    # Batch-tile selection: big enough to amortize per-step overhead, but
    # produce >= 2 grid steps whenever possible (v7x has 2 TensorCores).
    if B >= 2 * _TB_MAX:
        tb = _TB_MAX
    else:
        tb = max(1, B // 2)
    nb = pl.cdiv(B, tb)

    x_flat = image.reshape(B, P_in)                  # contiguous reshape (free)
    pad = nb * tb - B
    if pad:
        x_flat = jnp.pad(x_flat, ((0, pad), (0, 0)))
    x_blk = x_flat.reshape(nb, tb, P_in)

    out_blk = pl.pallas_call(
        _upsample_kernel,
        out_shape=jax.ShapeDtypeStruct((nb, tb, P_out), image.dtype),
        grid_spec=pltpu.PrefetchScalarGridSpec(
            num_scalar_prefetch=0,
            grid=(nb,),
            in_specs=[
                # Weight: full array, constant index_map -> DMA'd once, resident.
                pl.BlockSpec((P_in, P_out), lambda b: (0, 0)),
                # Input slab of TB planes.
                pl.BlockSpec((1, tb, P_in), lambda b: (b, 0, 0)),
            ],
            out_specs=pl.BlockSpec((1, tb, P_out), lambda b: (b, 0, 0)),
        ),
        compiler_params=pltpu.CompilerParams(
            dimension_semantics=("parallel",),
        ),
    )(kt, x_blk)

    out = out_blk.reshape(nb * tb, P_out)
    if pad:
        out = out[:B]
    return out.reshape(N, C, H_out, W_out)


if __name__ == "__main__":
    key = jax.random.PRNGKey(0)
    x = jax.random.normal(key, (2, 4, 16, 16), dtype=jnp.float32)

    y = upsample(x, IMAGE_SIZE)
    y = jax.block_until_ready(y)

    assert y.shape == (2, 4, IMAGE_SIZE, IMAGE_SIZE)
    assert y.dtype == x.dtype

    # Reference: half-pixel bilinear (matches torch align_corners=False upsample).
    y_ref = jax.image.resize(x, (2, 4, IMAGE_SIZE, IMAGE_SIZE), method="bilinear")
    np.testing.assert_allclose(np.asarray(y), np.asarray(y_ref), rtol=1e-4, atol=1e-4)

    print("KERNEL_OK")
</pallas_src>

<mosaic_0001>
module attributes {stable_mosaic.version = 11 : i64} {
  func.func @_upsample_kernel(%arg0: i32, %arg1: memref<256x1024xf32, #tpu.memory_space<vmem>>, %arg2: memref<1x4x256xf32, #tpu.memory_space<vmem>>, %arg3: memref<1x4x1024xf32, #tpu.memory_space<vmem>>) attributes {dimension_semantics = [#tpu.dimension_semantics<parallel>], iteration_bounds = array<i64: 2>, scalar_prefetch = 0 : i64, scratch_operands = 0 : i64, tpu.core_type = #tpu.core_type<tc>, window_params = [{pipeline_mode = #tpu.pipeline_mode<synchronous>, transform_indices = @transform_0, window_bounds = array<i64: 256, 1024>}, {transform_indices = @transform_1, window_bounds = array<i64: 1, 4, 256>}, {transform_indices = @transform_2, window_bounds = array<i64: 1, 4, 1024>}]} {
    %c0 = arith.constant 0 : index
    %c0_0 = arith.constant 0 : index
    %c0_1 = arith.constant 0 : index
    %0 = vector.load %arg2[%c0, %c0_0, %c0_1] : memref<1x4x256xf32, #tpu.memory_space<vmem>>, vector<1x4x256xf32>
    %1 = vector.shape_cast %0 : vector<1x4x256xf32> to vector<4x256xf32>
    %c0_2 = arith.constant 0 : index
    %c0_3 = arith.constant 0 : index
    %2 = vector.load %arg1[%c0_2, %c0_3] : memref<256x1024xf32, #tpu.memory_space<vmem>>, vector<256x1024xf32>
    %cst = arith.constant dense<0.000000e+00> : vector<4x1024xf32>
    %3 = tpu.matmul %1, %2, %cst {dimension_numbers = #tpu.dot_dimension_numbers<[1], [0], [0], [1], [0, 0, 1, 1], [], []>} : vector<4x256xf32>, vector<256x1024xf32>, vector<4x1024xf32> -> vector<4x1024xf32>
    %c0_4 = arith.constant 0 : index
    %c0_5 = arith.constant 0 : index
    %c0_6 = arith.constant 0 : index
    %4 = vector.load %arg3[%c0_4, %c0_5, %c0_6] : memref<1x4x1024xf32, #tpu.memory_space<vmem>>, vector<1x4x1024xf32>
    %5 = vector.shape_cast %4 : vector<1x4x1024xf32> to vector<4x1024xf32>
    %6 = vector.shape_cast %3 : vector<4x1024xf32> to vector<1x4x1024xf32>
    tpu.vector_store %arg3[%c0_4, %c0_5, %c0_6], %6 {strides = array<i32>} : memref<1x4x1024xf32, #tpu.memory_space<vmem>>, vector<1x4x1024xf32>,
    return
  }
  func.func @transform_0(%arg0: i32) -> (i32, i32) {
    %c0_i32 = arith.constant 0 : i32
    %c0_i32_0 = arith.constant 0 : i32
    %c0_i32_1 = arith.constant 0 : i32
    return %c0_i32, %c0_i32_0 : i32, i32
  }
  func.func @transform_1(%arg0: i32) -> (i32, i32, i32) {
    %c0_i32 = arith.constant 0 : i32
    %c0_i32_0 = arith.constant 0 : i32
    %c0_i32_1 = arith.constant 0 : i32
    return %arg0, %c0_i32, %c0_i32_0 : i32, i32, i32
  }
  func.func @transform_2(%arg0: i32) -> (i32, i32, i32) {
    %c0_i32 = arith.constant 0 : i32
    %c0_i32_0 = arith.constant 0 : i32
    %c0_i32_1 = arith.constant 0 : i32
    return %arg0, %c0_i32, %c0_i32_0 : i32, i32, i32
  }
}

</mosaic_0001>

<bundles_post_ra>
// kernel: tpu_custom_call.1
= control target key start
LH: loop header
LB: loop body
LE: loop exit
PB: predicated region body
PF: predicated region fallthrough
CT: control target
= control target key end

     0   :  { %7 = vsyncpa [#allocation3], 0  ;;  %s1534_s0 = inlined_call_operand.hbm [shape: f32[256,1024], index: 0, kind: input, shape index: {}]   ;;  %s1535_s1 = inlined_call_operand.hbm [shape: f32[2,4,256], index: 1, kind: input, shape index: {}]   ;;  %s1536_s2 = inlined_call_operand.hbm [shape: f32[2,4,1024], index: 2, kind: output, shape index: {}]  }
   0x1   :  { %8 = vsyncpa [#allocation6], 0 }
   0x2   :  { %10 = vsyncpa [#allocation6 + $0x1], 0 }
   0x3   :  { %11 = vsyncpa [#allocation4], 0 }
   0x4   :  { %13 = vsyncpa [#allocation4 + $0x1], 0  ;;  %s1320_s9 = smov 0   ;;  %s1322_s10 = smov 0  }
   0x5   :  { %s1324_s11 = smov 0   ;;  %s1326_s12 = smov 0  }
   0x6 LB: > { %s1341_s13 = sadd.s32 4294967295, %s1298_s12   ;;  %s836_s14 = sadd.s32 4294967294, %s1298_s12   ;;  %s1298_s12 = sphi %s1326_s12, %s1556_s12   ;;  %s1294_s11 = sphi %s1324_s11, %s1555_s11   ;;  %s1290_s10 = sphi %s1322_s10, %s1554_s10   ;;  %s1286_s9 = sphi %s1320_s9, %s1553_s9  }
   0x7   : > { %p60_p0 = scmp.ne.s32.totalorder %s1290_s10, %s1286_s9  ;;  %p1537_p1 = scmp.eq.s32.totalorder %s1341_s13, 0 }
   0x8   : > { %p90_p3 = scmp.eq.s32.totalorder %s836_s14, 1  ;;  %p837_p5 = scmp.ge.s32.totalorder %s1298_s12, 1 }
   0x9   : > { %p1350_p4 = por %p1537_p1, %p60_p0  ;;  %p97_p7 = scmp.lt.s32.totalorder %s1298_s12, 3 }
   0xa   : > { %p1355_p6 = por %p90_p3, %p60_p0  ;;  %s1300_s18 = smov [#allocation2]  }
   0xb   : > { %s1540_s15 = scalar_select %p1350_p4, 1, 0 }
   0xc   : > { %s1541_s16 = scalar_select %p1355_p6, 1, 0 }
   0xd   : > { %p1360_p8 = pnand %p837_p5, %p97_p7  ;;  %s109_s19 = sshll.u32 %s1300_s18, 4  ;;  %s1364_s19 = int_to_ptr.vmem [resolvable:$true] %s109_s19 }
   0xe   : > { %s1376_s21 = sadd.s32 1, %s1298_s12   ;;  %s47_s22 = sadd.s32 1, %s1294_s11 }
   0xf   : > { %s1542_s17 = scalar_select %p1360_p8, 1, 0 }
  0x10   : > { %p1118_p9 = pneg %p1360_p8  ;;  %s44_s23 = ssub.s32 %s1298_s12, %s1376_s21 }
  0x11   : > { %s1170_s26 = scalar_lea.hbm %s1534_s0, 32768 }
  0x12   : > { %p1371_p11 = pnand %p1118_p9, %p1537_p1  ;;  %p1171_p12 = scmp.ne.s32.totalorder %s1534_s0, %s1170_s26 }
  0x13   : > { %p1177_p5 = scmp.lt.u32.totalorder %s1170_s26, %s1534_s0 }
  0x14   : > { %p1172_p13 = pneg %p1371_p11 }
  0x16   : > { %p1173_p0 = pnand %p1172_p13, %p1171_p12 }
  0x18   : > { %p1174_p3 = pneg %p1173_p0 }
  0x1a   : > { %p1179_p7 = pnand %p1177_p5, %p1174_p3 }
  0x1c   : > { %1182 = shalt.err (!%p1179_p7)
}
  0x1d   : > { %s1183_s3 = scalar_lea.vmem %s1364_s19, 32768  ;;  %p1191_p2 = scmp.lt.s32.totalorder %s1364_s19, %s1364_s19 }
  0x1e   : > { %p1184_p9 = scmp.ne.s32.totalorder %s1364_s19, %s1183_s3  ;;  %p1192_p6 = scmp.lt.s32.totalorder %s1183_s3, %s1183_s3 }
  0x20   : > { %p1186_p10 = pnand %p1184_p9, %p1172_p13  ;;  %p1193_p4 = por %p1192_p6, %p1191_p2 }
  0x22   : > { %p1187_p1 = pneg %p1186_p10 }
  0x24   : > { %p1194_p8 = pnand %p1193_p4, %p1187_p1 }
  0x26   : > { %1197 = shalt.err (!%p1194_p8)
}
  0x27   : > { %s1301_s4 = smov 1024   ;;  %s1302_s5 = smov 64  }
  0x28   : > { %1121 = dma.hbm_to_vmem [thread:$0]  (!%p1371_p11), %s1534_s0, 32768, %s1364_s19, [#allocation3], %s1301_s4, %s1301_s4, %s1302_s5  }
  0x29   : > { %p45_p2 = scmp.eq.s32.totalorder %s44_s23, 0  ;;  %p54_p1 = scmp.ne.s32.totalorder %s1294_s11, %s1290_s10 }
  0x2a   : > { %p55_p4 = scmp.eq.s32.totalorder %s1298_s12, 0  ;;  %p1131_p6 = scmp.lt.s32.totalorder %s1298_s12, 2 }
  0x2b   : > { %s1407_s8 = scalar_select %p45_p2, %s1294_s11, %s47_s22  }
  0x2c   : > { %p56_p8 = por %p55_p4, %p54_p1  ;;  %p1544_p10 = scmp.eq.s32.totalorder %s1341_s13, 1 }
  0x2d   : > { %s123_s18 = sand.u32 1, %s1294_s11   ;;  %s852_s24 = sshll.u32 %s1298_s12, 7 }
  0x2e   : > { %p1411_p12 = por %p1544_p10, %p54_p1  ;;  %s840_s25 = sshll.u32 %s123_s18, 3 }
  0x2f   : > { %s1420_s27 = scalar_lea.hbm %s1535_s1, %s852_s24  ;;  %s127_s19 = scalar_lea.vmem [#allocation5], %s840_s25 }
  0x30   : > { %s135_s22 = sshll.u32 %s127_s19, 4  ;;  %p1422_p11 = pnand %p1131_p6, %p56_p8  ;;  %s1426_s22 = int_to_ptr.vmem [resolvable:$true] %s135_s22 }
  0x31   : > { %s124_s28 = scalar_lea.sflag [#allocation6], %s123_s18  ;;  %s1198_s29 = scalar_lea.hbm %s1420_s27, 128 }
  0x32   : > { %p1199_p13 = scmp.ne.s32.totalorder %s1420_s27, %s1198_s29  ;;  %p1200_p0 = pneg %p1422_p11 }
  0x33   : > { %s1203_s4 = scalar_lea.hbm %s1535_s1, 256  ;;  %p1204_p7 = scmp.lt.u32.totalorder %s1420_s27, %s1535_s1 }
  0x34   : > { %p1201_p3 = pnand %p1200_p0, %p1199_p13  ;;  %p1205_p9 = scmp.lt.u32.totalorder %s1203_s4, %s1198_s29 }
  0x35   : > { %p1207_p1 = scmp.lt.u32.totalorder %s1198_s29, %s1420_s27 }
  0x36   : > { %p1202_p5 = pneg %p1201_p3  ;;  %p1206_p2 = por %p1205_p9, %p1204_p7 }
  0x38   : > { %p1208_p4 = por %p1207_p1, %p1206_p2 }
  0x3a   : > { %p1209_p6 = pnand %p1208_p4, %p1202_p5 }
  0x3c   : > { %1212 = shalt.err (!%p1209_p6)
}
  0x3d   : > { %s1213_s7 = scalar_lea.vmem %s1426_s22, 128  ;;  %s1303_s18 = smov [#allocation5]  }
  0x3e   : > { %p1214_p8 = scmp.ne.s32.totalorder %s1426_s22, %s1213_s7  ;;  %s1218_s24 = sshll.u32 %s1303_s18, 4  ;;  %s1219_s24 = int_to_ptr.vmem [resolvable:$false] %s1218_s24 }
  0x3f   : > { %s1220_s25 = scalar_lea.vmem %s1219_s24, 256  ;;  %p1221_p3 = scmp.lt.s32.totalorder %s1426_s22, %s1219_s24 }
  0x40   : > { %p1216_p10 = pnand %p1214_p8, %p1200_p0  ;;  %p1222_p7 = scmp.lt.s32.totalorder %s1220_s25, %s1213_s7 }
  0x42   : > { %p1217_p13 = pneg %p1216_p10  ;;  %p1223_p9 = por %p1222_p7, %p1221_p3 }
  0x44   : > { %p1224_p2 = pnand %p1223_p9, %p1217_p13 }
  0x46   : > { %1227 = shalt.err (!%p1224_p2)
}
  0x47   : > { %1125 = dma.hbm_to_vmem [thread:$0]  (!%p1422_p11), %s1420_s27, 128, %s1426_s22, %s124_s28  }
  0x48   : > { %p1547_p5 = scmp.ne.s32.totalorder %s1542_s17, 0 }
  0x49   : > { %p1548_p0 = scmp.eq.s32.totalorder (!%p1547_p5), %s1341_s13, 0 }
  0x4a   : > { %144 = sbr.rel (%p1547_p5) target bundleno = 448 (0x1c0), region = 28 }
  0x51   : > { %1273 = dma.done.wait (%p1548_p0), [#allocation3], 32768   ;;  %p1549_p1 = pmov %p1548_p0 }
  0x52   : > { %s1460_s20 = sand.u32 1, %s1290_s10   ;;  %p1550_p11 = scmp.ne.s32.totalorder %s1540_s15, 0 }
  0x53   : > { %1275 = vsyncadd (%p1549_p1), [#allocation3], 4294934528  ;;  %s845_s26 = sshll.u32 %s1460_s20, 3  ;;  %s151_s19 = scalar_lea.sflag [#allocation6], %s1460_s20 }
  0x54   : > { %s1464_s23 = scalar_lea.vmem [#allocation5], %s845_s26 }
  0x55   : > { %1277 = dma.done.wait (%p1550_p11), %s151_s19, 128  }
  0x56   : > { %1279 = vsyncadd (%p1550_p11), %s151_s19, 4294967168  ;;  %v177_v0 = vld [vmem:[#allocation2 + $0x8] sm:$0xff]  ;;  %v179_v2 = vld [vmem:[#allocation2 + $0x18] sm:$0xff]  ;;  %s846_s15 = sshll.u32 %s1460_s20, 5  ;;  %s853_s27 = sshll.u32 %s1341_s13, 9 }
  0x57   : > { %v185_v1 = vld [vmem:[#allocation2 + $0x48] sm:$0xff]  ;;  %v187_v4 = vld [vmem:[#allocation2 + $0x58] sm:$0xff]  ;;  %v176_v5 = vld [vmem:[#allocation2] sm:$0xff]  ;;  %s174_s17 = scalar_lea.vmem [#allocation7], %s846_s15  ;;  %s1490_s30 = scalar_lea.hbm %s1536_s2, %s853_s27 }
  0x58   : > { %v854_v3 = vpack.c.bf16 %v185_v1, %v177_v0  ;;  %v184_v6 = vld [vmem:[#allocation2 + $0x40] sm:$0xff]  ;;  %v918_v7 = vpack.c.bf16 %v187_v4, %v179_v2  ;;  %v178_v9 = vld [vmem:[#allocation2 + $0x10] sm:$0xff]  ;;  %v193_v11 = vld [vmem:[#allocation2 + $0x88] sm:$0xff]  ;;  %s754_s22 = sshll.u32 %s174_s17, 4  ;;  %s740_s3 = scalar_lea.sflag [#allocation4], %s1460_s20  ;;  %s1492_s22 = int_to_ptr.vmem [resolvable:$true] %s754_s22 }
  0x59   : > { %v856_v8 = vpack.c.bf16 %v184_v6, %v176_v5  ;;  %v186_v10 = vld [vmem:[#allocation2 + $0x50] sm:$0xff]  ;;  %v201_v13 = vld [vmem:[#allocation2 + $0xc8] sm:$0xff]  ;;  %v195_v14 = vld [vmem:[#allocation2 + $0x98] sm:$0xff]  ;;  %s1228_s13 = scalar_lea.vmem %s1492_s22, 512  ;;  %s1304_s4 = smov [#allocation7]  }
  0x5a   : > { %855 = vmatprep.subr.bf16.mxu0 %v854_v3  ;;  %v920_v12 = vpack.c.bf16 %v186_v10, %v178_v9  ;;  %v203_v15 = vld [vmem:[#allocation2 + $0xd8] sm:$0xff]  ;;  %919 = vmatprep.subr.bf16.mxu1 %v918_v7  ;;  %v858_v16 = vpack.c.bf16 %v201_v13, %v193_v11  ;;  %v192_v18 = vld [vmem:[#allocation2 + $0x80] sm:$0xff]  ;;  %v194_v20 = vld [vmem:[#allocation2 + $0x90] sm:$0xff]  ;;  %p1229_p4 = scmp.ne.s32.totalorder %s1492_s22, %s1228_s13  ;;  %s1232_s5 = sshll.u32 %s1304_s4, 4  ;;  %s1233_s5 = int_to_ptr.vmem [resolvable:$false] %s1232_s5 }
  0x5b   : > { %857 = vmatpush1.bf16.msra.mxu0 %v856_v8  ;;  %v922_v17 = vpack.c.bf16 %v203_v15, %v195_v14  ;;  %v200_v19 = vld [vmem:[#allocation2 + $0xc0] sm:$0xff]  ;;  %v202_v22 = vld [vmem:[#allocation2 + $0xd0] sm:$0xff]  ;;  %v209_v23 = vld [vmem:[#allocation2 + $0x108] sm:$0xff]  ;;  %s1234_s6 = scalar_lea.vmem %s1233_s5, 1024  ;;  %p1235_p10 = scmp.lt.s32.totalorder %s1492_s22, %s1233_s5 }
  0x5c   : > { %921 = vmatpush1.bf16.msra.mxu1 %v920_v12  ;;  %v860_v21 = vpack.c.bf16 %v200_v19, %v192_v18  ;;  %v217_v24 = vld [vmem:[#allocation2 + $0x148] sm:$0xff]  ;;  %859 = vmatprep.subr.bf16.mxu0 %v858_v16  ;;  %v924_v25 = vpack.c.bf16 %v202_v22, %v194_v20  ;;  %v211_v27 = vld [vmem:[#allocation2 + $0x118] sm:$0xff]  ;;  %v208_v29 = vld [vmem:[#allocation2 + $0x100] sm:$0xff]  ;;  %p1230_p6 = pnand %p1229_p4, %p1411_p12  ;;  %p1236_p13 = scmp.lt.s32.totalorder %s1234_s6, %s1228_s13 }
  0x5d   : > { %923 = vmatprep.subr.bf16.mxu1 %v922_v17  ;;  %v862_v26 = vpack.c.bf16 %v217_v24, %v209_v23  ;;  %v219_v28 = vld [vmem:[#allocation2 + $0x158] sm:$0xff]  ;;  %v216_v31 = vld [vmem:[#allocation2 + $0x140] sm:$0xff]  ;;  %v210_v32 = vld [vmem:[#allocation2 + $0x110] sm:$0xff] }
  0x5e   : > { %v926_v30 = vpack.c.bf16 %v219_v28, %v211_v27  ;;  %v218_v33 = vld [vmem:[#allocation2 + $0x150] sm:$0xff]  ;;  %v864_v34 = vpack.c.bf16 %v216_v31, %v208_v29  ;;  %v225_v35 = vld [vmem:[#allocation2 + $0x188] sm:$0xff]  ;;  %v227_v37 = vld [vmem:[#allocation2 + $0x198] sm:$0xff]  ;;  %p1231_p8 = pneg %p1230_p6  ;;  %p1237_p3 = por %p1236_p13, %p1235_p10 }
  0x5f   : > { %861 = vmatpush1.bf16.msra.mxu0 %v860_v21  ;;  %v233_v36 = vld [vmem:[#allocation2 + $0x1c8] sm:$0xff]  ;;  %v928_v38 = vpack.c.bf16 %v218_v33, %v210_v32  ;;  %v235_v40 = vld [vmem:[#allocation2 + $0x1d8] sm:$0xff]  ;;  %v224_v41 = vld [vmem:[#allocation2 + $0x180] sm:$0xff] }
  0x60   : > { %925 = vmatpush1.bf16.msra.mxu1 %v924_v25  ;;  %863 = vmatprep.subr.bf16.mxu0 %v862_v26  ;;  %v866_v39 = vpack.c.bf16 %v233_v36, %v225_v35  ;;  %v232_v42 = vld [vmem:[#allocation2 + $0x1c0] sm:$0xff]  ;;  %v930_v43 = vpack.c.bf16 %v235_v40, %v227_v37  ;;  %v226_v44 = vld [vmem:[#allocation2 + $0x190] sm:$0xff]  ;;  %v241_v46 = vld [vmem:[#allocation2 + $0x208] sm:$0xff]  ;;  %p1238_p7 = pnand %p1237_p3, %p1231_p8 }
  0x61   : > { %927 = vmatprep.subr.bf16.mxu1 %v926_v30  ;;  %v234_v45 = vld [vmem:[#allocation2 + $0x1d0] sm:$0xff]  ;;  %v249_v47 = vld [vmem:[#allocation2 + $0x248] sm:$0xff]  ;;  %v243_v48 = vld [vmem:[#allocation2 + $0x218] sm:$0xff]  ;;  %v868_v50 = vpack.c.bf16 %v232_v42, %v224_v41 }
  0x62   : > { %v251_v49 = vld [vmem:[#allocation2 + $0x258] sm:$0xff]  ;;  %v932_v51 = vpack.c.bf16 %v234_v45, %v226_v44  ;;  %v870_v52 = vpack.c.bf16 %v249_v47, %v241_v46  ;;  %v240_v53 = vld [vmem:[#allocation2 + $0x200] sm:$0xff]  ;;  %v242_v55 = vld [vmem:[#allocation2 + $0x210] sm:$0xff] }
  0x63   : > { %865 = vmatpush1.bf16.msra.mxu0 %v864_v34  ;;  %v248_v54 = vld [vmem:[#allocation2 + $0x240] sm:$0xff]  ;;  %v934_v56 = vpack.c.bf16 %v251_v49, %v243_v48  ;;  %v250_v57 = vld [vmem:[#allocation2 + $0x250] sm:$0xff]  ;;  %v257_v58 = vld [vmem:[#allocation2 + $0x288] sm:$0xff] }
  0x64   : > { %929 = vmatpush1.bf16.msra.mxu1 %v928_v38  ;;  %867 = vmatprep.subr.bf16.mxu0 %v866_v39  ;;  %v265_v59 = vld [vmem:[#allocation2 + $0x2c8] sm:$0xff]  ;;  %v259_v60 = vld [vmem:[#allocation2 + $0x298] sm:$0xff]  ;;  %v872_v62 = vpack.c.bf16 %v248_v54, %v240_v53  ;;  %v936_v63 = vpack.c.bf16 %v250_v57, %v242_v55  ;;  %v256_v1 = vld [vmem:[#allocation2 + $0x280] sm:$0xff] }
  0x65   : > { %931 = vmatprep.subr.bf16.mxu1 %v930_v43  ;;  %v267_v61 = vld [vmem:[#allocation2 + $0x2d8] sm:$0xff]  ;;  %v874_v0 = vpack.c.bf16 %v265_v59, %v257_v58  ;;  %v264_v2 = vld [vmem:[#allocation2 + $0x2c0] sm:$0xff]  ;;  %v258_v3 = vld [vmem:[#allocation2 + $0x290] sm:$0xff] }
  0x66   : > { %v938_v4 = vpack.c.bf16 %v267_v61, %v259_v60  ;;  %v266_v5 = vld [vmem:[#allocation2 + $0x2d0] sm:$0xff]  ;;  %v273_v6 = vld [vmem:[#allocation2 + $0x308] sm:$0xff]  ;;  %v275_v8 = vld [vmem:[#allocation2 + $0x318] sm:$0xff]  ;;  %v876_v10 = vpack.c.bf16 %v264_v2, %v256_v1 }
  0x67   : > { %869 = vmatpush1.bf16.msra.mxu0 %v868_v50  ;;  %v281_v7 = vld [vmem:[#allocation2 + $0x348] sm:$0xff]  ;;  %v283_v9 = vld [vmem:[#allocation2 + $0x358] sm:$0xff]  ;;  %v940_v11 = vpack.c.bf16 %v266_v5, %v258_v3  ;;  %v272_v13 = vld [vmem:[#allocation2 + $0x300] sm:$0xff] }
  0x68   : > { %933 = vmatpush1.bf16.msra.mxu1 %v932_v51  ;;  %871 = vmatprep.subr.bf16.mxu0 %v870_v52  ;;  %v878_v12 = vpack.c.bf16 %v281_v7, %v273_v6  ;;  %v280_v14 = vld [vmem:[#allocation2 + $0x340] sm:$0xff]  ;;  %v274_v15 = vld [vmem:[#allocation2 + $0x310] sm:$0xff]  ;;  %v942_v16 = vpack.c.bf16 %v283_v9, %v275_v8  ;;  %v289_v18 = vld [vmem:[#allocation2 + $0x388] sm:$0xff] }
  0x69   : > { %935 = vmatprep.subr.bf16.mxu1 %v934_v56  ;;  %v282_v17 = vld [vmem:[#allocation2 + $0x350] sm:$0xff]  ;;  %v297_v19 = vld [vmem:[#allocation2 + $0x3c8] sm:$0xff]  ;;  %v291_v20 = vld [vmem:[#allocation2 + $0x398] sm:$0xff]  ;;  %v880_v22 = vpack.c.bf16 %v280_v14, %v272_v13 }
  0x6a   : > { %v299_v21 = vld [vmem:[#allocation2 + $0x3d8] sm:$0xff]  ;;  %v944_v23 = vpack.c.bf16 %v282_v17, %v274_v15  ;;  %v882_v24 = vpack.c.bf16 %v297_v19, %v289_v18  ;;  %v288_v25 = vld [vmem:[#allocation2 + $0x380] sm:$0xff]  ;;  %v290_v27 = vld [vmem:[#allocation2 + $0x390] sm:$0xff] }
  0x6b   : > { %873 = vmatpush1.bf16.msra.mxu0 %v872_v62  ;;  %v296_v26 = vld [vmem:[#allocation2 + $0x3c0] sm:$0xff]  ;;  %v946_v28 = vpack.c.bf16 %v299_v21, %v291_v20  ;;  %v298_v29 = vld [vmem:[#allocation2 + $0x3d0] sm:$0xff]  ;;  %v305_v30 = vld [vmem:[#allocation2 + $0x408] sm:$0xff] }
  0x6c   : > { %937 = vmatpush1.bf16.msra.mxu1 %v936_v63  ;;  %875 = vmatprep.subr.bf16.mxu0 %v874_v0  ;;  %v313_v31 = vld [vmem:[#allocation2 + $0x448] sm:$0xff]  ;;  %v307_v32 = vld [vmem:[#allocation2 + $0x418] sm:$0xff]  ;;  %v884_v34 = vpack.c.bf16 %v296_v26, %v288_v25  ;;  %v948_v35 = vpack.c.bf16 %v298_v29, %v290_v27  ;;  %v304_v37 = vld [vmem:[#allocation2 + $0x400] sm:$0xff] }
  0x6d   : > { %939 = vmatprep.subr.bf16.mxu1 %v938_v4  ;;  %v315_v33 = vld [vmem:[#allocation2 + $0x458] sm:$0xff]  ;;  %v886_v36 = vpack.c.bf16 %v313_v31, %v305_v30  ;;  %v312_v38 = vld [vmem:[#allocation2 + $0x440] sm:$0xff]  ;;  %v306_v39 = vld [vmem:[#allocation2 + $0x410] sm:$0xff] }
  0x6e   : > { %v950_v40 = vpack.c.bf16 %v315_v33, %v307_v32  ;;  %v314_v41 = vld [vmem:[#allocation2 + $0x450] sm:$0xff]  ;;  %v321_v42 = vld [vmem:[#allocation2 + $0x488] sm:$0xff]  ;;  %v323_v44 = vld [vmem:[#allocation2 + $0x498] sm:$0xff]  ;;  %v888_v46 = vpack.c.bf16 %v312_v38, %v304_v37 }
  0x6f   : > { %877 = vmatpush1.bf16.msra.mxu0 %v876_v10  ;;  %v329_v43 = vld [vmem:[#allocation2 + $0x4c8] sm:$0xff]  ;;  %v331_v45 = vld [vmem:[#allocation2 + $0x4d8] sm:$0xff]  ;;  %v952_v47 = vpack.c.bf16 %v314_v41, %v306_v39  ;;  %v320_v49 = vld [vmem:[#allocation2 + $0x480] sm:$0xff] }
  0x70   : > { %941 = vmatpush1.bf16.msra.mxu1 %v940_v11  ;;  %879 = vmatprep.subr.bf16.mxu0 %v878_v12  ;;  %v890_v48 = vpack.c.bf16 %v329_v43, %v321_v42  ;;  %v328_v50 = vld [vmem:[#allocation2 + $0x4c0] sm:$0xff]  ;;  %v322_v51 = vld [vmem:[#allocation2 + $0x490] sm:$0xff]  ;;  %v954_v52 = vpack.c.bf16 %v331_v45, %v323_v44  ;;  %v337_v54 = vld [vmem:[#allocation2 + $0x508] sm:$0xff] }
  0x71   : > { %943 = vmatprep.subr.bf16.mxu1 %v942_v16  ;;  %v330_v53 = vld [vmem:[#allocation2 + $0x4d0] sm:$0xff]  ;;  %v345_v55 = vld [vmem:[#allocation2 + $0x548] sm:$0xff]  ;;  %v339_v56 = vld [vmem:[#allocation2 + $0x518] sm:$0xff]  ;;  %v892_v58 = vpack.c.bf16 %v328_v50, %v320_v49 }
  0x72   : > { %v347_v57 = vld [vmem:[#allocation2 + $0x558] sm:$0xff]  ;;  %v956_v59 = vpack.c.bf16 %v330_v53, %v322_v51  ;;  %v894_v60 = vpack.c.bf16 %v345_v55, %v337_v54  ;;  %v336_v61 = vld [vmem:[#allocation2 + $0x500] sm:$0xff]  ;;  %v338_v63 = vld [vmem:[#allocation2 + $0x510] sm:$0xff] }
  0x73   : > { %881 = vmatpush1.bf16.msra.mxu0 %v880_v22  ;;  %v344_v62 = vld [vmem:[#allocation2 + $0x540] sm:$0xff]  ;;  %v958_v0 = vpack.c.bf16 %v347_v57, %v339_v56  ;;  %v346_v1 = vld [vmem:[#allocation2 + $0x550] sm:$0xff]  ;;  %v353_v2 = vld [vmem:[#allocation2 + $0x588] sm:$0xff] }
  0x74   : > { %945 = vmatpush1.bf16.msra.mxu1 %v944_v23  ;;  %883 = vmatprep.subr.bf16.mxu0 %v882_v24  ;;  %v361_v3 = vld [vmem:[#allocation2 + $0x5c8] sm:$0xff]  ;;  %v355_v4 = vld [vmem:[#allocation2 + $0x598] sm:$0xff]  ;;  %v896_v6 = vpack.c.bf16 %v344_v62, %v336_v61  ;;  %v352_v7 = vld [vmem:[#allocation2 + $0x580] sm:$0xff]  ;;  %v960_v8 = vpack.c.bf16 %v346_v1, %v338_v63 }
  0x75   : > { %947 = vmatprep.subr.bf16.mxu1 %v946_v28  ;;  %v363_v5 = vld [vmem:[#allocation2 + $0x5d8] sm:$0xff]  ;;  %v898_v9 = vpack.c.bf16 %v361_v3, %v353_v2  ;;  %v360_v10 = vld [vmem:[#allocation2 + $0x5c0] sm:$0xff]  ;;  %v354_v11 = vld [vmem:[#allocation2 + $0x590] sm:$0xff] }
  0x76   : > { %v362_v12 = vld [vmem:[#allocation2 + $0x5d0] sm:$0xff]  ;;  %v962_v13 = vpack.c.bf16 %v363_v5, %v355_v4  ;;  %v369_v14 = vld [vmem:[#allocation2 + $0x608] sm:$0xff]  ;;  %v371_v17 = vld [vmem:[#allocation2 + $0x618] sm:$0xff]  ;;  %v900_v20 = vpack.c.bf16 %v360_v10, %v352_v7 }
  0x77   : > { %885 = vmatpush1.bf16.msra.mxu0 %v884_v34  ;;  %v377_v15 = vld [vmem:[#allocation2 + $0x648] sm:$0xff]  ;;  %v379_v18 = vld [vmem:[#allocation2 + $0x658] sm:$0xff]  ;;  %v964_v21 = vpack.c.bf16 %v362_v12, %v354_v11  ;;  %v368_v23 = vld [vmem:[#allocation2 + $0x600] sm:$0xff] }
  0x78   : > { %949 = vmatpush1.bf16.msra.mxu1 %v948_v35  ;;  %887 = vmatprep.subr.bf16.mxu0 %v886_v36  ;;  %v1471_v16 = vld [vmem:[%s1464_s23] sm:$0xff]  ;;  %v902_v22 = vpack.c.bf16 %v377_v15, %v369_v14  ;;  %v370_v25 = vld [vmem:[#allocation2 + $0x610] sm:$0xff]  ;;  %v966_v26 = vpack.c.bf16 %v379_v18, %v371_v17  ;;  %v387_v30 = vld [vmem:[#allocation2 + $0x698] sm:$0xff] }
  0x79   : > { %951 = vmatprep.subr.bf16.mxu1 %v950_v40  ;;  %v1475_v19 = vcombine.high %v1471_v16, %v1471_v16  ;;  %v376_v24 = vld [vmem:[#allocation2 + $0x640] sm:$0xff]  ;;  %v378_v27 = vld [vmem:[#allocation2 + $0x650] sm:$0xff]  ;;  %v385_v28 = vld [vmem:[#allocation2 + $0x688] sm:$0xff] }
  0x7a   : > { %v393_v29 = vld [vmem:[#allocation2 + $0x6c8] sm:$0xff]  ;;  %v395_v31 = vld [vmem:[#allocation2 + $0x6d8] sm:$0xff]  ;;  %v904_v32 = vpack.c.bf16 %v376_v24, %v368_v23  ;;  %v968_v33 = vpack.c.bf16 %v378_v27, %v370_v25  ;;  %v384_v35 = vld [vmem:[#allocation2 + $0x680] sm:$0xff] }
  0x7b   : > { %889 = vmatpush1.bf16.msra.mxu0 %v888_v46  ;;  %499 = vmatprep.mubr.f32.mxu0 %v1475_v19  ;;  %v906_v34 = vpack.c.bf16 %v393_v29, %v385_v28  ;;  %v392_v36 = vld [vmem:[#allocation2 + $0x6c0] sm:$0xff]  ;;  %v386_v37 = vld [vmem:[#allocation2 + $0x690] sm:$0xff]  ;;  %v970_v38 = vpack.c.bf16 %v395_v31, %v387_v30  ;;  %v401_v40 = vld [vmem:[#allocation2 + $0x708] sm:$0xff] }
  0x7c   : > { %953 = vmatpush1.bf16.msra.mxu1 %v952_v47  ;;  %891 = vmatprep.subr.bf16.mxu0 %v890_v48  ;;  %v394_v39 = vld [vmem:[#allocation2 + $0x6d0] sm:$0xff]  ;;  %v409_v41 = vld [vmem:[#allocation2 + $0x748] sm:$0xff]  ;;  %v403_v42 = vld [vmem:[#allocation2 + $0x718] sm:$0xff]  ;;  %v908_v44 = vpack.c.bf16 %v392_v36, %v384_v35 }
  0x7d   : > { %955 = vmatprep.subr.bf16.mxu1 %v954_v52  ;;  %570 = vmatprep.mubr.f32.mxu1 %v1475_v19  ;;  %v411_v43 = vld [vmem:[#allocation2 + $0x758] sm:$0xff]  ;;  %v972_v45 = vpack.c.bf16 %v394_v39, %v386_v37  ;;  %v910_v46 = vpack.c.bf16 %v409_v41, %v401_v40  ;;  %v400_v47 = vld [vmem:[#allocation2 + $0x700] sm:$0xff]  ;;  %v402_v49 = vld [vmem:[#allocation2 + $0x710] sm:$0xff] }
  0x7e   : > { %v408_v48 = vld [vmem:[#allocation2 + $0x740] sm:$0xff]  ;;  %v974_v50 = vpack.c.bf16 %v411_v43, %v403_v42  ;;  %v410_v51 = vld [vmem:[#allocation2 + $0x750] sm:$0xff]  ;;  %v417_v52 = vld [vmem:[#allocation2 + $0x788] sm:$0xff] }
  0x7f   : > { %893 = vmatpush1.bf16.msra.mxu0 %v892_v58  ;;  %v425_v53 = vld [vmem:[#allocation2 + $0x7c8] sm:$0xff]  ;;  %v419_v54 = vld [vmem:[#allocation2 + $0x798] sm:$0xff]  ;;  %v912_v56 = vpack.c.bf16 %v408_v48, %v400_v47  ;;  %v976_v57 = vpack.c.bf16 %v410_v51, %v402_v49  ;;  %v418_v61 = vld [vmem:[#allocation2 + $0x790] sm:$0xff] }
  0x80   : > { %957 = vmatpush1.bf16.msra.mxu1 %v956_v59  ;;  %895 = vmatprep.subr.bf16.mxu0 %v894_v60  ;;  %v427_v55 = vld [vmem:[#allocation2 + $0x7d8] sm:$0xff]  ;;  %v914_v58 = vpack.c.bf16 %v425_v53, %v417_v52  ;;  %v416_v59 = vld [vmem:[#allocation2 + $0x780] sm:$0xff]  ;;  %v426_v63 = vld [vmem:[#allocation2 + $0x7d0] sm:$0xff] }
  0x81   : > { %959 = vmatprep.subr.bf16.mxu1 %v958_v0  ;;  %v424_v60 = vld [vmem:[#allocation2 + $0x7c0] sm:$0xff]  ;;  %v978_v62 = vpack.c.bf16 %v427_v55, %v419_v54  ;;  %v181_v0 = vld [vmem:[#allocation2 + $0x28] sm:$0xff]  ;;  %v183_v2 = vld [vmem:[#allocation2 + $0x38] sm:$0xff]  ;;  %v980_v5 = vpack.c.bf16 %v426_v63, %v418_v61 }
  0x82   : > { %v189_v1 = vld [vmem:[#allocation2 + $0x68] sm:$0xff]  ;;  %v191_v3 = vld [vmem:[#allocation2 + $0x78] sm:$0xff]  ;;  %v916_v4 = vpack.c.bf16 %v424_v60, %v416_v59  ;;  %v180_v7 = vld [vmem:[#allocation2 + $0x20] sm:$0xff] }
  0x83   : > { %897 = vmatpush1.bf16.msra.mxu0 %v896_v6  ;;  %v982_v6 = vpack.c.bf16 %v189_v1, %v181_v0  ;;  %v1046_v10 = vpack.c.bf16 %v191_v3, %v183_v2  ;;  %v190_v11 = vld [vmem:[#allocation2 + $0x70] sm:$0xff]  ;;  %v197_v12 = vld [vmem:[#allocation2 + $0xa8] sm:$0xff]  ;;  %v199_v14 = vld [vmem:[#allocation2 + $0xb8] sm:$0xff] }
  0x84   : > { %961 = vmatpush1.bf16.msra.mxu1 %v960_v8  ;;  %899 = vmatprep.subr.bf16.mxu0 %v898_v9  ;;  %v188_v8 = vld [vmem:[#allocation2 + $0x60] sm:$0xff]  ;;  %v182_v9 = vld [vmem:[#allocation2 + $0x30] sm:$0xff]  ;;  %v207_v15 = vld [vmem:[#allocation2 + $0xf8] sm:$0xff] }
  0x85   : > { %963 = vmatprep.subr.bf16.mxu1 %v962_v13  ;;  %v205_v13 = vld [vmem:[#allocation2 + $0xe8] sm:$0xff]  ;;  %v984_v17 = vpack.c.bf16 %v188_v8, %v180_v7  ;;  %v1048_v18 = vpack.c.bf16 %v190_v11, %v182_v9  ;;  %v198_v23 = vld [vmem:[#allocation2 + $0xb0] sm:$0xff]  ;;  %v1050_v24 = vpack.c.bf16 %v207_v15, %v199_v14  ;;  %v215_v28 = vld [vmem:[#allocation2 + $0x138] sm:$0xff] }
  0x86   : > { %v206_v25 = vld [vmem:[#allocation2 + $0xf0] sm:$0xff]  ;;  %v221_v27 = vld [vmem:[#allocation2 + $0x168] sm:$0xff]  ;;  %v223_v29 = vld [vmem:[#allocation2 + $0x178] sm:$0xff] }
  0x87   : > { %901 = vmatpush1.bf16.msra.mxu0 %v900_v20  ;;  %v986_v20 = vpack.c.bf16 %v205_v13, %v197_v12  ;;  %v1052_v31 = vpack.c.bf16 %v206_v25, %v198_v23  ;;  %v214_v35 = vld [vmem:[#allocation2 + $0x130] sm:$0xff]  ;;  %v1054_v36 = vpack.c.bf16 %v223_v29, %v215_v28  ;;  %v237_v39 = vld [vmem:[#allocation2 + $0x1e8] sm:$0xff]  ;;  %v231_v40 = vld [vmem:[#allocation2 + $0x1b8] sm:$0xff] }
  0x88   : > { %965 = vmatpush1.bf16.msra.mxu1 %v964_v21  ;;  %903 = vmatprep.subr.bf16.mxu0 %v902_v22  ;;  %v196_v21 = vld [vmem:[#allocation2 + $0xa0] sm:$0xff]  ;;  %v222_v37 = vld [vmem:[#allocation2 + $0x170] sm:$0xff]  ;;  %v239_v41 = vld [vmem:[#allocation2 + $0x1f8] sm:$0xff] }
  0x89   : > { %967 = vmatprep.subr.bf16.mxu1 %v966_v26  ;;  %v204_v22 = vld [vmem:[#allocation2 + $0xe0] sm:$0xff]  ;;  %v213_v26 = vld [vmem:[#allocation2 + $0x128] sm:$0xff]  ;;  %v1056_v43 = vpack.c.bf16 %v222_v37, %v214_v35  ;;  %v230_v47 = vld [vmem:[#allocation2 + $0x1b0] sm:$0xff]  ;;  %v1058_v48 = vpack.c.bf16 %v239_v41, %v231_v40 }
  0x8a   : > { %v988_v30 = vpack.c.bf16 %v204_v22, %v196_v21  ;;  %v238_v49 = vld [vmem:[#allocation2 + $0x1f0] sm:$0xff]  ;;  %v253_v51 = vld [vmem:[#allocation2 + $0x268] sm:$0xff]  ;;  %v247_v52 = vld [vmem:[#allocation2 + $0x238] sm:$0xff] }
  0x8b   : > { %905 = vmatpush1.bf16.msra.mxu0 %v904_v32  ;;  %v990_v32 = vpack.c.bf16 %v221_v27, %v213_v26  ;;  %v255_v53 = vld [vmem:[#allocation2 + $0x278] sm:$0xff]  ;;  %v254_v60 = vld [vmem:[#allocation2 + $0x270] sm:$0xff]  ;;  %v261_v61 = vld [vmem:[#allocation2 + $0x2a8] sm:$0xff] }
  0x8c   : > { %969 = vmatpush1.bf16.msra.mxu1 %v968_v33  ;;  %907 = vmatprep.subr.bf16.mxu0 %v906_v34  ;;  %v212_v33 = vld [vmem:[#allocation2 + $0x120] sm:$0xff]  ;;  %v1062_v59 = vpack.c.bf16 %v255_v53, %v247_v52  ;;  %v263_v63 = vld [vmem:[#allocation2 + $0x2b8] sm:$0xff]  ;;  %v270_v8 = vld [vmem:[#allocation2 + $0x2f0] sm:$0xff] }
  0x8d   : > { %971 = vmatprep.subr.bf16.mxu1 %v970_v38  ;;  %v220_v34 = vld [vmem:[#allocation2 + $0x160] sm:$0xff]  ;;  %v229_v38 = vld [vmem:[#allocation2 + $0x1a8] sm:$0xff]  ;;  %v271_v0 = vld [vmem:[#allocation2 + $0x2f8] sm:$0xff] }
  0x8e   : > { %v992_v42 = vpack.c.bf16 %v220_v34, %v212_v33  ;;  %v1066_v7 = vpack.c.bf16 %v271_v0, %v263_v63  ;;  %v277_v9 = vld [vmem:[#allocation2 + $0x328] sm:$0xff]  ;;  %v279_v11 = vld [vmem:[#allocation2 + $0x338] sm:$0xff]  ;;  %v286_v22 = vld [vmem:[#allocation2 + $0x370] sm:$0xff] }
  0x8f   : > { %909 = vmatpush1.bf16.msra.mxu0 %v908_v44  ;;  %v994_v44 = vpack.c.bf16 %v237_v39, %v229_v38  ;;  %v287_v12 = vld [vmem:[#allocation2 + $0x378] sm:$0xff]  ;;  %v293_v23 = vld [vmem:[#allocation2 + $0x3a8] sm:$0xff]  ;;  %v302_v34 = vld [vmem:[#allocation2 + $0x3f0] sm:$0xff] }
  0x90   : > { %973 = vmatpush1.bf16.msra.mxu1 %v972_v45  ;;  %911 = vmatprep.subr.bf16.mxu0 %v910_v46  ;;  %v228_v45 = vld [vmem:[#allocation2 + $0x1a0] sm:$0xff]  ;;  %v1070_v21 = vpack.c.bf16 %v287_v12, %v279_v11  ;;  %v295_v25 = vld [vmem:[#allocation2 + $0x3b8] sm:$0xff]  ;;  %v309_v35 = vld [vmem:[#allocation2 + $0x428] sm:$0xff] }
  0x91   : > { %975 = vmatprep.subr.bf16.mxu1 %v974_v50  ;;  %v236_v46 = vld [vmem:[#allocation2 + $0x1e0] sm:$0xff]  ;;  %v245_v50 = vld [vmem:[#allocation2 + $0x228] sm:$0xff]  ;;  %v303_v26 = vld [vmem:[#allocation2 + $0x3f8] sm:$0xff] }
  0x92   : > { %v996_v54 = vpack.c.bf16 %v236_v46, %v228_v45  ;;  %v998_v55 = vpack.c.bf16 %v253_v51, %v245_v50  ;;  %v1074_v33 = vpack.c.bf16 %v303_v26, %v295_v25  ;;  %v311_v37 = vld [vmem:[#allocation2 + $0x438] sm:$0xff]  ;;  %v318_v46 = vld [vmem:[#allocation2 + $0x470] sm:$0xff] }
  0x93   : > { %913 = vmatpush1.bf16.msra.mxu0 %v912_v56  ;;  %v244_v56 = vld [vmem:[#allocation2 + $0x220] sm:$0xff]  ;;  %v319_v38 = vld [vmem:[#allocation2 + $0x478] sm:$0xff] }
  0x94   : > { %977 = vmatpush1.bf16.msra.mxu1 %v976_v57  ;;  %915 = vmatprep.subr.bf16.mxu0 %v914_v58  ;;  %v252_v57 = vld [vmem:[#allocation2 + $0x260] sm:$0xff]  ;;  %v246_v58 = vld [vmem:[#allocation2 + $0x230] sm:$0xff]  ;;  %v1078_v45 = vpack.c.bf16 %v319_v38, %v311_v37  ;;  %v335_v50 = vld [vmem:[#allocation2 + $0x4f8] sm:$0xff] }
  0x95   : > { %979 = vmatprep.subr.bf16.mxu1 %v978_v62  ;;  %v269_v62 = vld [vmem:[#allocation2 + $0x2e8] sm:$0xff]  ;;  %v1000_v1 = vpack.c.bf16 %v252_v57, %v244_v56  ;;  %v1064_v2 = vpack.c.bf16 %v254_v60, %v246_v58  ;;  %v334_v57 = vld [vmem:[#allocation2 + $0x4f0] sm:$0xff]  ;;  %v343_v60 = vld [vmem:[#allocation2 + $0x538] sm:$0xff] }
  0x96   : > { %v1002_v3 = vpack.c.bf16 %v269_v62, %v261_v61  ;;  %v341_v58 = vld [vmem:[#allocation2 + $0x528] sm:$0xff]  ;;  %v351_v61 = vld [vmem:[#allocation2 + $0x578] sm:$0xff] }
  0x97   : > { %917 = vmatpush1.bf16.msra.mxu0 %v916_v4  ;;  %v260_v4 = vld [vmem:[#allocation2 + $0x2a0] sm:$0xff] }
  0x98   : > { %981 = vmatpush1.bf16.msra.mxu1 %v980_v5  ;;  %983 = vmatprep.subr.bf16.mxu0 %v982_v6  ;;  %v268_v5 = vld [vmem:[#allocation2 + $0x2e0] sm:$0xff]  ;;  %v262_v6 = vld [vmem:[#allocation2 + $0x2b0] sm:$0xff] }
  0x99   : > { %1047 = vmatprep.subr.bf16.mxu1 %v1046_v10  ;;  %v285_v10 = vld [vmem:[#allocation2 + $0x368] sm:$0xff]  ;;  %v1004_v13 = vpack.c.bf16 %v268_v5, %v260_v4  ;;  %v1068_v14 = vpack.c.bf16 %v270_v8, %v262_v6  ;;  %v1086_v4 = vpack.c.bf16 %v351_v61, %v343_v60  ;;  %v350_v5 = vld [vmem:[#allocation2 + $0x570] sm:$0xff]  ;;  %v359_v8 = vld [vmem:[#allocation2 + $0x5b8] sm:$0xff] }
  0x9a   : > { %500 = vmatmul.mubr.f32.vlgmr.msra.gmra.mrb[0].mxu0 %v1471_v16  ;;  %v1006_v15 = vpack.c.bf16 %v285_v10, %v277_v9  ;;  %v357_v6 = vld [vmem:[#allocation2 + $0x5a8] sm:$0xff]  ;;  %v367_v9 = vld [vmem:[#allocation2 + $0x5f8] sm:$0xff] }
  0x9b   : > { %571 = vmatmul.mubr.f32.vlgmr.msra.gmra.mrb[0].mxu1 %v1471_v16  ;;  %985 = vmatpush1.bf16.msra.mxu0 %v984_v17  ;;  %v276_v17 = vld [vmem:[#allocation2 + $0x320] sm:$0xff] }
  0x9c   : > { %1049 = vmatpush1.bf16.msra.mxu1 %v1048_v18  ;;  %987 = vmatprep.subr.bf16.mxu0 %v986_v20  ;;  %v284_v18 = vld [vmem:[#allocation2 + $0x360] sm:$0xff]  ;;  %v278_v20 = vld [vmem:[#allocation2 + $0x330] sm:$0xff] }
  0x9d   : > { %1051 = vmatprep.subr.bf16.mxu1 %v1050_v24  ;;  %641 = vmatprep.mubr.f32.mxu0 %v1475_v19  ;;  %v301_v24 = vld [vmem:[#allocation2 + $0x3e8] sm:$0xff]  ;;  %v1008_v27 = vpack.c.bf16 %v284_v18, %v276_v17  ;;  %v1072_v28 = vpack.c.bf16 %v286_v22, %v278_v20  ;;  %v1090_v17 = vpack.c.bf16 %v367_v9, %v359_v8  ;;  %v366_v18 = vld [vmem:[#allocation2 + $0x5f0] sm:$0xff]  ;;  %v375_v22 = vld [vmem:[#allocation2 + $0x638] sm:$0xff] }
  0x9e   : > { %712 = vmatprep.mubr.f32.mxu1 %v1475_v19  ;;  %v1060_v19 = vpack.c.bf16 %v238_v49, %v230_v47  ;;  %v1010_v29 = vpack.c.bf16 %v301_v24, %v293_v23  ;;  %v325_v47 = vld [vmem:[#allocation2 + $0x4a8] sm:$0xff]  ;;  %v327_v49 = vld [vmem:[#allocation2 + $0x4b8] sm:$0xff] }
  0x9f   : > { %989 = vmatpush1.bf16.msra.mxu0 %v988_v30  ;;  %v292_v30 = vld [vmem:[#allocation2 + $0x3a0] sm:$0xff]  ;;  %v1082_v56 = vpack.c.bf16 %v335_v50, %v327_v49  ;;  %v373_v20 = vld [vmem:[#allocation2 + $0x628] sm:$0xff]  ;;  %v383_v23 = vld [vmem:[#allocation2 + $0x678] sm:$0xff] }
  0xa0   : > { %1053 = vmatpush1.bf16.msra.mxu1 %v1052_v31  ;;  %991 = vmatprep.subr.bf16.mxu0 %v990_v32  ;;  %v300_v31 = vld [vmem:[#allocation2 + $0x3e0] sm:$0xff]  ;;  %v294_v32 = vld [vmem:[#allocation2 + $0x3b0] sm:$0xff] }
  0xa1   : > { %1055 = vmatprep.subr.bf16.mxu1 %v1054_v36  ;;  %v317_v36 = vld [vmem:[#allocation2 + $0x468] sm:$0xff]  ;;  %v1012_v39 = vpack.c.bf16 %v300_v31, %v292_v30  ;;  %v1076_v40 = vpack.c.bf16 %v302_v34, %v294_v32  ;;  %v1094_v30 = vpack.c.bf16 %v383_v23, %v375_v22  ;;  %v382_v31 = vld [vmem:[#allocation2 + $0x670] sm:$0xff]  ;;  %v391_v34 = vld [vmem:[#allocation2 + $0x6b8] sm:$0xff] }
  0xa2   : > { %v1014_v41 = vpack.c.bf16 %v317_v36, %v309_v35  ;;  %v389_v32 = vld [vmem:[#allocation2 + $0x6a8] sm:$0xff]  ;;  %v399_v35 = vld [vmem:[#allocation2 + $0x6f8] sm:$0xff] }
  0xa3   : > { %993 = vmatpush1.bf16.msra.mxu0 %v992_v42  ;;  %v308_v42 = vld [vmem:[#allocation2 + $0x420] sm:$0xff] }
  0xa4   : > { %1057 = vmatpush1.bf16.msra.mxu1 %v1056_v43  ;;  %995 = vmatprep.subr.bf16.mxu0 %v994_v44  ;;  %v316_v43 = vld [vmem:[#allocation2 + $0x460] sm:$0xff]  ;;  %v310_v44 = vld [vmem:[#allocation2 + $0x430] sm:$0xff] }
  0xa5   : > { %1059 = vmatprep.subr.bf16.mxu1 %v1058_v48  ;;  %v333_v48 = vld [vmem:[#allocation2 + $0x4e8] sm:$0xff]  ;;  %v1016_v51 = vpack.c.bf16 %v316_v43, %v308_v42  ;;  %v1080_v52 = vpack.c.bf16 %v318_v46, %v310_v44  ;;  %v1098_v42 = vpack.c.bf16 %v399_v35, %v391_v34  ;;  %v398_v43 = vld [vmem:[#allocation2 + $0x6f0] sm:$0xff]  ;;  %v407_v46 = vld [vmem:[#allocation2 + $0x738] sm:$0xff] }
  0xa6   : > { %v1018_v53 = vpack.c.bf16 %v333_v48, %v325_v47  ;;  %v405_v44 = vld [vmem:[#allocation2 + $0x728] sm:$0xff]  ;;  %v415_v47 = vld [vmem:[#allocation2 + $0x778] sm:$0xff] }
  0xa7   : > { %997 = vmatpush1.bf16.msra.mxu0 %v996_v54  ;;  %v324_v54 = vld [vmem:[#allocation2 + $0x4a0] sm:$0xff] }
  0xa8   : > { %1061 = vmatpush1.bf16.msra.mxu1 %v1060_v19  ;;  %999 = vmatprep.subr.bf16.mxu0 %v998_v55  ;;  %v332_v19 = vld [vmem:[#allocation2 + $0x4e0] sm:$0xff]  ;;  %v326_v55 = vld [vmem:[#allocation2 + $0x4b0] sm:$0xff] }
  0xa9   : > { %1063 = vmatprep.subr.bf16.mxu1 %v1062_v59  ;;  %v349_v59 = vld [vmem:[#allocation2 + $0x568] sm:$0xff]  ;;  %v1020_v62 = vpack.c.bf16 %v332_v19, %v324_v54  ;;  %v1084_v63 = vpack.c.bf16 %v334_v57, %v326_v55  ;;  %v1102_v54 = vpack.c.bf16 %v415_v47, %v407_v46  ;;  %v414_v19 = vld [vmem:[#allocation2 + $0x770] sm:$0xff]  ;;  %v423_v57 = vld [vmem:[#allocation2 + $0x7b8] sm:$0xff] }
  0xaa   : > { %v1022_v0 = vpack.c.bf16 %v349_v59, %v341_v58  ;;  %v421_v55 = vld [vmem:[#allocation2 + $0x7a8] sm:$0xff]  ;;  %v431_v58 = vld [vmem:[#allocation2 + $0x7f8] sm:$0xff] }
  0xab   : > { %1001 = vmatpush1.bf16.msra.mxu0 %v1000_v1  ;;  %v340_v1 = vld [vmem:[#allocation2 + $0x520] sm:$0xff] }
  0xac   : > { %1065 = vmatpush1.bf16.msra.mxu1 %v1064_v2  ;;  %1003 = vmatprep.subr.bf16.mxu0 %v1002_v3  ;;  %v348_v2 = vld [vmem:[#allocation2 + $0x560] sm:$0xff]  ;;  %v342_v3 = vld [vmem:[#allocation2 + $0x530] sm:$0xff] }
  0xad   : > { %1067 = vmatprep.subr.bf16.mxu1 %v1066_v7  ;;  %v365_v7 = vld [vmem:[#allocation2 + $0x5e8] sm:$0xff]  ;;  %v1024_v10 = vpack.c.bf16 %v348_v2, %v340_v1  ;;  %v1088_v11 = vpack.c.bf16 %v350_v5, %v342_v3  ;;  %v422_v1 = vld [vmem:[#allocation2 + $0x7b0] sm:$0xff] }
  0xae   : > { %v1026_v12 = vpack.c.bf16 %v365_v7, %v357_v6  ;;  %v430_v2 = vld [vmem:[#allocation2 + $0x7f0] sm:$0xff] }
  0xaf   : > { %1005 = vmatpush1.bf16.msra.mxu0 %v1004_v13  ;;  %v356_v13 = vld [vmem:[#allocation2 + $0x5a0] sm:$0xff] }
  0xb0   : > { %1069 = vmatpush1.bf16.msra.mxu1 %v1068_v14  ;;  %1007 = vmatprep.subr.bf16.mxu0 %v1006_v15  ;;  %v364_v14 = vld [vmem:[#allocation2 + $0x5e0] sm:$0xff]  ;;  %v358_v15 = vld [vmem:[#allocation2 + $0x5b0] sm:$0xff] }
  0xb1   : > { %1071 = vmatprep.subr.bf16.mxu1 %v1070_v21  ;;  %v381_v21 = vld [vmem:[#allocation2 + $0x668] sm:$0xff]  ;;  %v1028_v24 = vpack.c.bf16 %v364_v14, %v356_v13  ;;  %v1092_v25 = vpack.c.bf16 %v366_v18, %v358_v15 }
  0xb2   : > { %v1030_v26 = vpack.c.bf16 %v381_v21, %v373_v20 }
  0xb3   : > { %1009 = vmatpush1.bf16.msra.mxu0 %v1008_v27  ;;  %v372_v27 = vld [vmem:[#allocation2 + $0x620] sm:$0xff] }
  0xb4   : > { %1073 = vmatpush1.bf16.msra.mxu1 %v1072_v28  ;;  %1011 = vmatprep.subr.bf16.mxu0 %v1010_v29  ;;  %v380_v28 = vld [vmem:[#allocation2 + $0x660] sm:$0xff]  ;;  %v374_v29 = vld [vmem:[#allocation2 + $0x630] sm:$0xff] }
  0xb5   : > { %1075 = vmatprep.subr.bf16.mxu1 %v1074_v33  ;;  %v397_v33 = vld [vmem:[#allocation2 + $0x6e8] sm:$0xff]  ;;  %v1032_v36 = vpack.c.bf16 %v380_v28, %v372_v27  ;;  %v1096_v37 = vpack.c.bf16 %v382_v31, %v374_v29 }
  0xb6   : > { %v1034_v38 = vpack.c.bf16 %v397_v33, %v389_v32 }
  0xb7   : > { %1013 = vmatpush1.bf16.msra.mxu0 %v1012_v39  ;;  %v388_v39 = vld [vmem:[#allocation2 + $0x6a0] sm:$0xff] }
  0xb8   : > { %1077 = vmatpush1.bf16.msra.mxu1 %v1076_v40  ;;  %1015 = vmatprep.subr.bf16.mxu0 %v1014_v41  ;;  %v396_v40 = vld [vmem:[#allocation2 + $0x6e0] sm:$0xff]  ;;  %v390_v41 = vld [vmem:[#allocation2 + $0x6b0] sm:$0xff] }
  0xb9   : > { %1079 = vmatprep.subr.bf16.mxu1 %v1078_v45  ;;  %v413_v45 = vld [vmem:[#allocation2 + $0x768] sm:$0xff]  ;;  %v1036_v48 = vpack.c.bf16 %v396_v40, %v388_v39  ;;  %v1100_v49 = vpack.c.bf16 %v398_v43, %v390_v41 }
  0xba   : > { %v1038_v50 = vpack.c.bf16 %v413_v45, %v405_v44 }
  0xbb   : > { %1017 = vmatpush1.bf16.msra.mxu0 %v1016_v51  ;;  %v404_v51 = vld [vmem:[#allocation2 + $0x720] sm:$0xff] }
  0xbc   : > { %1081 = vmatpush1.bf16.msra.mxu1 %v1080_v52  ;;  %1019 = vmatprep.subr.bf16.mxu0 %v1018_v53  ;;  %v412_v52 = vld [vmem:[#allocation2 + $0x760] sm:$0xff]  ;;  %v406_v53 = vld [vmem:[#allocation2 + $0x730] sm:$0xff] }
  0xbd   : > { %1083 = vmatprep.subr.bf16.mxu1 %v1082_v56  ;;  %v429_v56 = vld [vmem:[#allocation2 + $0x7e8] sm:$0xff]  ;;  %v1040_v59 = vpack.c.bf16 %v412_v52, %v404_v51  ;;  %v1104_v60 = vpack.c.bf16 %v414_v19, %v406_v53 }
  0xbe   : > { %v1042_v61 = vpack.c.bf16 %v429_v56, %v421_v55 }
  0xbf   : > { %1021 = vmatpush1.bf16.msra.mxu0 %v1020_v62  ;;  %v420_v62 = vld [vmem:[#allocation2 + $0x7a0] sm:$0xff] }
  0xc0   : > { %1085 = vmatpush1.bf16.msra.mxu1 %v1084_v63  ;;  %1023 = vmatprep.subr.bf16.mxu0 %v1022_v0  ;;  %v428_v63 = vld [vmem:[#allocation2 + $0x7e0] sm:$0xff]  ;;  %v1106_v0 = vpack.c.bf16 %v431_v58, %v423_v57 }
  0xc1   : > { %1087 = vmatprep.subr.bf16.mxu1 %v1086_v4  ;;  %v1044_v3 = vpack.c.bf16 %v428_v63, %v420_v62  ;;  %v1108_v4 = vpack.c.bf16 %v430_v2, %v422_v1 }
  0xc3   : > { %1025 = vmatpush1.bf16.msra.mxu0 %v1024_v10 }
  0xc4   : > { %1089 = vmatpush1.bf16.msra.mxu1 %v1088_v11  ;;  %1027 = vmatprep.subr.bf16.mxu0 %v1026_v12 }
  0xc5   : > { %1091 = vmatprep.subr.bf16.mxu1 %v1090_v17 }
  0xc7   : > { %1029 = vmatpush1.bf16.msra.mxu0 %v1028_v24 }
  0xc8   : > { %1093 = vmatpush1.bf16.msra.mxu1 %v1092_v25  ;;  %1031 = vmatprep.subr.bf16.mxu0 %v1030_v26 }
  0xc9   : > { %1095 = vmatprep.subr.bf16.mxu1 %v1094_v30 }
  0xcb   : > { %1033 = vmatpush1.bf16.msra.mxu0 %v1032_v36 }
  0xcc   : > { %1097 = vmatpush1.bf16.msra.mxu1 %v1096_v37  ;;  %1035 = vmatprep.subr.bf16.mxu0 %v1034_v38 }
  0xcd   : > { %1099 = vmatprep.subr.bf16.mxu1 %v1098_v42 }
  0xcf   : > { %1037 = vmatpush1.bf16.msra.mxu0 %v1036_v48 }
  0xd0   : > { %1101 = vmatpush1.bf16.msra.mxu1 %v1100_v49  ;;  %1039 = vmatprep.subr.bf16.mxu0 %v1038_v50 }
  0xd1   : > { %1103 = vmatprep.subr.bf16.mxu1 %v1102_v54 }
  0xd3   : > { %1041 = vmatpush1.bf16.msra.mxu0 %v1040_v59 }
  0xd4   : > { %1105 = vmatpush1.bf16.msra.mxu1 %v1104_v60  ;;  %1043 = vmatprep.subr.bf16.mxu0 %v1042_v61 }
  0xd5   : > { %1107 = vmatprep.subr.bf16.mxu1 %v1106_v0 }
  0xd7   : > { %1045 = vmatpush1.bf16.msra.mxu0 %v1044_v3 }
  0xd8   : > { %1109 = vmatpush1.bf16.msra.mxu1 %v1108_v4 }
  0xda   : > { %642 = vmatmul.mubr.f32.vlgmr.msra.gmra.mrb[2].mxu0 %v1471_v16 }
  0xdb   : > { %713 = vmatmul.mubr.f32.vlgmr.msra.gmra.mrb[2].mxu1 %v1471_v16 }
 0x16d   : > { %v501_v5 = vpop.f32.mrb[0].mxu0 }
 0x16e   : > { %v572_v6 = vpop.f32.mrb[0].mxu1  ;;  %v503_v7 = vpop.f32.mrb[1].mxu0 }
 0x16f   : > { %v727_v8 = vcombine.low %v501_v5, %v503_v7  ;;  %v574_v9 = vpop.f32.mrb[1].mxu1 }
 0x170   : > { %v728_v10 = vcombine.low %v572_v6, %v574_v9 }
 0x171   : > { %735 = vst [vmem:[%s174_s17] sm:$0xff] %v727_v8 }
 0x172   : > { %736 = vst [vmem:[%s174_s17 + $0x8] sm:$0xff] %v728_v10 }
 0x1ad   : > { %v643_v11 = vpop.f32.mrb[2].mxu0 }
 0x1ae   : > { %v714_v12 = vpop.f32.mrb[2].mxu1  ;;  %v645_v13 = vpop.f32.mrb[3].mxu0 }
 0x1af   : > { %v729_v14 = vcombine.low %v643_v11, %v645_v13  ;;  %v716_v15 = vpop.f32.mrb[3].mxu1 }
 0x1b0   : > { %v730_v16 = vcombine.low %v714_v12, %v716_v15 }
 0x1b1   : > { %737 = vst [vmem:[%s174_s17 + $0x10] sm:$0xff] %v729_v14 }
 0x1b2   : > { %738 = vst [vmem:[%s174_s17 + $0x18] sm:$0xff] %v730_v16 }
 0x1b3   : > { %1241 = shalt.err (!%p1238_p7)
}
 0x1b4   : > { %s1242_s7 = scalar_lea.hbm %s1490_s30, 512  ;;  %s1246_s25 = scalar_lea.hbm %s1536_s2, 1024 }
 0x1b5   : > { %p1243_p9 = scmp.ne.s32.totalorder %s1490_s30, %s1242_s7  ;;  %p1247_p0 = scmp.lt.u32.totalorder %s1490_s30, %s1536_s2 }
 0x1b6   : > { %p1248_p1 = scmp.lt.u32.totalorder %s1246_s25, %s1242_s7  ;;  %p1250_p4 = scmp.lt.u32.totalorder %s1242_s7, %s1490_s30 }
 0x1b7   : > { %p1244_p2 = pnand %p1243_p9, %p1411_p12 }
 0x1b8   : > { %p1249_p11 = por %p1248_p1, %p1247_p0 }
 0x1b9   : > { %p1245_p5 = pneg %p1244_p2 }
 0x1ba   : > { %p1251_p6 = por %p1250_p4, %p1249_p11 }
 0x1bc   : > { %p1252_p8 = pnand %p1251_p6, %p1245_p5 }
 0x1be   : > { %1255 = shalt.err (!%p1252_p8)
}
 0x1bf   : > { %1116 = dma.vmem_to_hbm [thread:$0]  (%p1411_p12), %s1492_s22, 512, %s1490_s30, %s740_s3  }
 0x1c0 PF: > { %s766_s19 = sand.u32 1, %s1286_s9   ;;  %p1551_p10 = scmp.ne.s32.totalorder %s1541_s16, 0 }
 0x1c1   : > { %p1552_p13 = scmp.ge.s32.totalorder %s1298_s12, 2  ;;  %s767_s23 = scalar_lea.sflag [#allocation4], %s766_s19 }
 0x1c3   : > { %p1127_p3 = pnand %p1552_p13, %p1551_p10 }
 0x1c5   : > { %1281 = dma.done.wait (!%p1127_p3), %s767_s23, 512  }
 0x1c6   : > { %1283 = vsyncadd (!%p1127_p3), %s767_s23, 4294966784  ;;  %p16_p7 = scmp.ge.s32.totalorder %s1376_s21, 4   ;;  %s1553_s9 = smov %s1290_s10 }
 0x1c7   : > { %s1554_s10 = smov %s1294_s11  ;;  %s1555_s11 = smov %s1407_s8 }
 0x1c8   : > { %s1556_s12 = smov %s1376_s21  ;;  %18 = sbr.rel (!%p16_p7) target bundleno = 6 (0x6), region = 78 }
 0x1cf   :  { %772 = vsyncpa [#allocation3], 1 }
 0x1d0   :  { %774 = vsyncpa [#allocation3 + $0x1], 1 }
 0x1d1   :  { %775 = vsyncpa [#allocation6], 1 }
 0x1d2   :  { %777 = vsyncpa [#allocation6 + $0x1], 1 }
 0x1d3   :  { %778 = vsyncpa [#allocation4], 1 }
 0x1d4   :  { %780 = vsyncpa [#allocation4 + $0x1], 1 }

</bundles_post_ra>
